<compile_context>
chip_gen: v6e
topology: v6e:2x2x1
jax: 0.10.0
libtpu: 0.0.40
codegen_flags: <defaults>
</compile_context>

<pallas_src>
import functools

import jax
import jax.numpy as jnp
from jax.experimental import pallas as pl
from jax.experimental.pallas import tpu as pltpu

MEM_DIM = 32
EPS = 1e-8           # nn.CosineSimilarity default eps
OUT_LANES = 128      # lane-dense output width; sliced to 2 outside the kernel


def _round_up(x, m):
    return ((x + m - 1) // m) * m


def _log_sigmoid(x):
    # Numerically stable: log_sigmoid(x) = min(x, 0) - log1p(exp(-|x|))
    return jnp.minimum(x, 0.0) - jnp.log1p(jnp.exp(-jnp.abs(x)))


def cossim_kernel(l_ref, r_ref, o_ref):
    l = l_ref[...].astype(jnp.float32)            # (T, D)
    r = r_ref[...].astype(jnp.float32)
    t = l.shape[0]

    # One fused cross-lane reduce for all three sums (dot, |l|^2, |r|^2).
    stacked = jnp.concatenate([l * r, l * l, r * r], axis=0)   # (3T, D)
    sums = jnp.sum(stacked, axis=-1, keepdims=True)            # (3T, 1)
    dot = sums[0:t, :]
    ll = sums[t:2 * t, :]
    rr = sums[2 * t:3 * t, :]

    # cos = dot / max(||l||*||r||, eps)  ==  dot * rsqrt(max(|l|^2*|r|^2, eps^2))
    cos = dot * jax.lax.rsqrt(jnp.maximum(ll * rr, EPS * EPS))  # (T, 1)

    # log_softmax([1 - cos, cos]) per row, via log_sigmoid of the logit gap.
    d = 1.0 - 2.0 * cos                       # (1 - cos) - cos
    out0 = _log_sigmoid(d)                    # log p(class 0) = (1-cos) - lse
    out1 = _log_sigmoid(-d)                   # log p(class 1) = cos     - lse

    # Lane-dense store: column 0 holds out0, all other columns hold out1;
    # the wrapper slices [:, :2]. Full 128-lane stores stay unmasked.
    col = jax.lax.broadcasted_iota(jnp.int32, (t, OUT_LANES), 1)
    o_ref[...] = jnp.where(col == 0, out0, out1)


@functools.partial(jax.jit, static_argnames=("row_tile",))
def cos_similarity_batched(lvec, rvec, row_tile=512):
    """lvec, rvec: (B, MEM_DIM) -> (B, 2) f32 log-probabilities per row."""
    assert lvec.shape == rvec.shape and lvec.ndim == 2
    b, d = lvec.shape

    tile = min(row_tile, _round_up(b, 8))
    bp = _round_up(b, tile)
    if bp != b:
        # Zero padding rows are harmless: eps clamp gives cos=0 -> finite logs.
        lvec = jnp.pad(lvec, ((0, bp - b), (0, 0)))
        rvec = jnp.pad(rvec, ((0, bp - b), (0, 0)))

    out = pl.pallas_call(
        cossim_kernel,
        out_shape=jax.ShapeDtypeStruct((bp, OUT_LANES), jnp.float32),
        grid=(bp // tile,),
        in_specs=[
            pl.BlockSpec((tile, d), lambda i: (i, 0)),
            pl.BlockSpec((tile, d), lambda i: (i, 0)),
        ],
        out_specs=pl.BlockSpec((tile, OUT_LANES), lambda i: (i, 0)),
        compiler_params=pltpu.CompilerParams(
            dimension_semantics=("parallel",)),
    )(lvec, rvec)
    return out[:b, :2]


def cos_similarity(lvec, rvec):
    """Module-equivalent forward: one (1, MEM_DIM) pair -> (1, 2) log-probs."""
    # TODO(synk): a single (1, 32) pair is pure dispatch/DMA overhead; in the
    # real model prefer batching many pairs (cos_similarity_batched) or fusing
    # this epilogue into the surrounding TreeLSTM kernel.
    return cos_similarity_batched(lvec, rvec)


def _reference(lvec, rvec):
    l = lvec.astype(jnp.float32)
    r = rvec.astype(jnp.float32)
    dot = jnp.sum(l * r, axis=-1)
    ll = jnp.sum(l * l, axis=-1)
    rr = jnp.sum(r * r, axis=-1)
    cos = dot / jnp.sqrt(jnp.maximum(ll * rr, EPS * EPS))
    logits = jnp.stack([1.0 - cos, cos], axis=-1)
    return jax.nn.log_softmax(logits, axis=-1)


if __name__ == "__main__":
    key = jax.random.PRNGKey(0)
    k1, k2, k3, k4 = jax.random.split(key, 4)

    # Module-shaped input: a single pair of mem_dim TreeLSTM hidden states.
    lvec1 = jax.random.normal(k1, (1, MEM_DIM), dtype=jnp.float32)
    rvec1 = jax.random.normal(k2, (1, MEM_DIM), dtype=jnp.float32)
    out1 = jax.block_until_ready(cos_similarity(lvec1, rvec1))
    ref1 = _reference(lvec1, rvec1)
    assert out1.shape == (1, 2) and out1.dtype == jnp.float32
    assert jnp.allclose(out1, ref1, atol=1e-5, rtol=1e-5)

    # Batched path: many pairs through one gridded pallas_call.
    B = 64
    lvecb = jax.random.normal(k3, (B, MEM_DIM), dtype=jnp.float32)
    rvecb = jax.random.normal(k4, (B, MEM_DIM), dtype=jnp.float32)
    outb = jax.block_until_ready(cos_similarity_batched(lvecb, rvecb))
    refb = _reference(lvecb, rvecb)
    assert outb.shape == (B, 2) and outb.dtype == jnp.float32
    assert jnp.allclose(outb, refb, atol=1e-5, rtol=1e-5)

    print("KERNEL_OK")
</pallas_src>

<mosaic_0001>
module attributes {stable_mosaic.version = 11 : i64} {
  func.func @cossim_kernel(%arg0: i32, %arg1: memref<8x32xf32, #tpu.memory_space<vmem>>, %arg2: memref<8x32xf32, #tpu.memory_space<vmem>>, %arg3: memref<8x128xf32, #tpu.memory_space<vmem>>) attributes {dimension_semantics = [#tpu.dimension_semantics<parallel>], iteration_bounds = array<i64: 1>, scalar_prefetch = 0 : i64, scratch_operands = 0 : i64, tpu.core_type = #tpu.core_type<tc>, window_params = [{transform_indices = @transform_0, window_bounds = array<i64: 8, 32>}, {transform_indices = @transform_1, window_bounds = array<i64: 8, 32>}, {transform_indices = @transform_2, window_bounds = array<i64: 8, 128>}]} {
    %c0 = arith.constant 0 : index
    %c0_0 = arith.constant 0 : index
    %0 = vector.load %arg1[%c0, %c0_0] : memref<8x32xf32, #tpu.memory_space<vmem>>, vector<8x32xf32>
    %c0_1 = arith.constant 0 : index
    %c0_2 = arith.constant 0 : index
    %1 = vector.load %arg2[%c0_1, %c0_2] : memref<8x32xf32, #tpu.memory_space<vmem>>, vector<8x32xf32>
    %2 = arith.mulf %0, %1 : vector<8x32xf32>
    %3 = arith.mulf %0, %0 : vector<8x32xf32>
    %4 = arith.mulf %1, %1 : vector<8x32xf32>
    %5 = tpu.concatenate %2, %3, %4 in 0 : vector<8x32xf32>, vector<8x32xf32>, vector<8x32xf32> -> vector<24x32xf32>
    %cst = arith.constant dense<0.000000e+00> : vector<24xf32>
    %6 = vector.multi_reduction <add>, %5, %cst [1] : vector<24x32xf32> to vector<24xf32>
    %7 = vector.shape_cast %6 : vector<24xf32> to vector<24x1xf32>
    %8 = vector.extract_strided_slice %7 {offsets = [0, 0], sizes = [8, 1], strides = [1, 1]} : vector<24x1xf32> to vector<8x1xf32>
    %9 = vector.extract_strided_slice %7 {offsets = [8, 0], sizes = [8, 1], strides = [1, 1]} : vector<24x1xf32> to vector<8x1xf32>
    %10 = vector.extract_strided_slice %7 {offsets = [16, 0], sizes = [8, 1], strides = [1, 1]} : vector<24x1xf32> to vector<8x1xf32>
    %11 = arith.mulf %9, %10 : vector<8x1xf32>
    %cst_3 = arith.constant 1.000000e-16 : f32
    %12 = vector.broadcast %cst_3 : f32 to vector<8x1xf32>
    %13 = arith.maximumf %11, %12 : vector<8x1xf32>
    %14 = math.rsqrt %13 : vector<8x1xf32>
    %15 = arith.mulf %8, %14 : vector<8x1xf32>
    %cst_4 = arith.constant 2.000000e+00 : f32
    %16 = vector.broadcast %cst_4 : f32 to vector<8x1xf32>
    %17 = arith.mulf %16, %15 : vector<8x1xf32>
    %cst_5 = arith.constant 1.000000e+00 : f32
    %18 = vector.broadcast %cst_5 : f32 to vector<8x1xf32>
    %19 = arith.subf %18, %17 : vector<8x1xf32>
    %cst_6 = arith.constant 0.000000e+00 : f32
    %20 = vector.broadcast %cst_6 : f32 to vector<8x1xf32>
    %21 = arith.minimumf %19, %20 : vector<8x1xf32>
    %22 = math.absf %19 : vector<8x1xf32>
    %cst_7 = arith.constant 0.000000e+00 : f32
    %23 = vector.broadcast %cst_7 : f32 to vector<8x1xf32>
    %24 = arith.subf %23, %22 : vector<8x1xf32>
    %25 = math.exp %24 : vector<8x1xf32>
    %26 = math.log1p %25 : vector<8x1xf32>
    %27 = arith.subf %21, %26 : vector<8x1xf32>
    %cst_8 = arith.constant 0.000000e+00 : f32
    %28 = vector.broadcast %cst_8 : f32 to vector<8x1xf32>
    %29 = arith.subf %28, %19 : vector<8x1xf32>
    %cst_9 = arith.constant 0.000000e+00 : f32
    %30 = vector.broadcast %cst_9 : f32 to vector<8x1xf32>
    %31 = arith.minimumf %29, %30 : vector<8x1xf32>
    %32 = math.absf %29 : vector<8x1xf32>
    %cst_10 = arith.constant 0.000000e+00 : f32
    %33 = vector.broadcast %cst_10 : f32 to vector<8x1xf32>
    %34 = arith.subf %33, %32 : vector<8x1xf32>
    %35 = math.exp %34 : vector<8x1xf32>
    %36 = math.log1p %35 : vector<8x1xf32>
    %37 = arith.subf %31, %36 : vector<8x1xf32>
    %38 = tpu.iota {dimensions = array<i32: 1>} : vector<8x128xi32>
    %c0_i32 = arith.constant 0 : i32
    %39 = vector.broadcast %c0_i32 : i32 to vector<8x128xi32>
    %40 = arith.cmpi eq, %38, %39 : vector<8x128xi32>
    %41 = vector.shape_cast %27 : vector<8x1xf32> to vector<8x1xf32>
    %42 = vector.broadcast %41 : vector<8x1xf32> to vector<8x128xf32>
    %43 = vector.shape_cast %37 : vector<8x1xf32> to vector<8x1xf32>
    %44 = vector.broadcast %43 : vector<8x1xf32> to vector<8x128xf32>
    %45 = arith.select %40, %42, %44 : vector<8x128xi1>, vector<8x128xf32>
    %c0_11 = arith.constant 0 : index
    %c0_12 = arith.constant 0 : index
    %46 = vector.load %arg3[%c0_11, %c0_12] : memref<8x128xf32, #tpu.memory_space<vmem>>, vector<8x128xf32>
    tpu.vector_store %arg3[%c0_11, %c0_12], %45 {strides = array<i32>} : memref<8x128xf32, #tpu.memory_space<vmem>>, vector<8x128xf32>,
    return
  }
  func.func @transform_0(%arg0: i32) -> (i32, i32) {
    %c0_i32 = arith.constant 0 : i32
    %c0_i32_0 = arith.constant 0 : i32
    return %arg0, %c0_i32 : i32, i32
  }
  func.func @transform_1(%arg0: i32) -> (i32, i32) {
    %c0_i32 = arith.constant 0 : i32
    %c0_i32_0 = arith.constant 0 : i32
    return %arg0, %c0_i32 : i32, i32
  }
  func.func @transform_2(%arg0: i32) -> (i32, i32) {
    %c0_i32 = arith.constant 0 : i32
    %c0_i32_0 = arith.constant 0 : i32
    return %arg0, %c0_i32 : i32, i32
  }
}

</mosaic_0001>

<bundles_post_ra>
// kernel: cos_similarity_batched.1
= control target key start
LH: loop header
LB: loop body
LE: loop exit
PB: predicated region body
PF: predicated region fallthrough
CT: control target
= control target key end

     0   :  { %vm16_vm0 = vcmask 261120   ;;  %v63_v30 = vlaneseq  ;;  %s106_s0 = inlined_call_operand.vmem [shape: f32[8,32], index: 0, kind: input, shape index: {}]   ;;  %s107_s1 = inlined_call_operand.vmem [shape: f32[8,32], index: 1, kind: input, shape index: {}]   ;;  %s108_s2 = inlined_call_operand.vmem [shape: f32[8,128], index: 2, kind: output, shape index: {}]  }
   0x1   :  { %v11_v0 = vld [vmem:[%s106_s0] sm:$0xff] }
   0x2   :  { %v12_v1 = vld [vmem:[%s107_s1] sm:$0xff]  ;;  %v14_v2 = vmul.f32 %v11_v0, %v11_v0  ;;  %v64_v36 = vand.u32 127, %v63_v30 }
   0x3   :  { %v15_v3 = vmul.f32 %v12_v1, %v12_v1  ;;  %v13_v4 = vmul.f32 %v12_v1, %v11_v0 }
   0x4   :  { %v20_v5 = vsel %vm16_vm0, %v14_v2, 0.0  ;;  %vm65_vm3 = vcmp.eq.s32.totalorder %v64_v36, 0 }
   0x5   :  { %v17_v6 = vsel %vm16_vm0, %v13_v4, 0.0  ;;  %21 = vadd.xlane.f32.xlu0 %v20_v5  ;;  %v23_v7 = vsel %vm16_vm0, %v15_v3, 0.0 }
   0x6   :  { %18 = vadd.xlane.f32.xlu1 %v17_v6 }
   0x9   :  { %24 = vadd.xlane.f32.xlu0 %v23_v7 }
  0x8e   :  { %v22_v8 = vpop.xlane.xlu0 %21 }
  0x8f   :  { %v19_v12 = vpop.xlane.xlu1 %18 }
  0x92   :  { %v25_v9 = vpop.xlane.xlu0 %24 }
  0x93   :  { %v26_v10 = vmul.f32 %v25_v9, %v22_v8 }
  0x95   :  { %v27_v11 = vmax.f32 %v26_v10, 1e-16 }
  0x97   :  { %72 = vrsqrt.f32 %v27_v11 }
  0xa4   :  { %v73_v13 = vpop.eup %72 }
  0xa5   :  { %v29_v14 = vmul.f32 %v73_v13, %v19_v12 }
  0xa7   :  { %v30_v15 = vmul.f32 2.0, %v29_v14 }
  0xa9   :  { %v31_v16 = vsub.f32 1.0, %v30_v15 }
  0xab   :  { %v33_v17 = vand.u32 2147483647, %v31_v16  ;;  %v47_v18 = vsub.f32 0.0, %v31_v16  ;;  %v32_v43 = vmin.f32 %v31_v16, 0.0 }
  0xad   :  { %v34_v19 = vsub.f32 0.0, %v33_v17  ;;  %v49_v20 = vand.u32 2147483647, %v47_v18  ;;  %v48_v44 = vmin.f32 %v47_v18, 0.0 }
  0xaf   :  { %v35_v21 = vmul.f32 1.442695, %v34_v19  ;;  %v50_v22 = vsub.f32 0.0, %v49_v20 }
  0xb1   :  { %74 = vpow2.f32 %v35_v21  ;;  %v51_v23 = vmul.f32 1.442695, %v50_v22 }
  0xb3   :  { %76 = vpow2.f32 %v51_v23 }
  0xbe   :  { %v75_v24 = vpop.eup %74 }
  0xbf   :  { %v37_v25 = vadd.f32 1.0, %v75_v24  ;;  %v40_v28 = vmul.f32 -0.5, %v75_v24  ;;  %v43_v32 = vand.u32 2147483647, %v75_v24 }
  0xc0   :  { %v77_v26 = vpop.eup %76 }
  0xc1   :  { %78 = vlog2.f32 %v37_v25  ;;  %v53_v27 = vadd.f32 1.0, %v77_v26  ;;  %v56_v29 = vmul.f32 -0.5, %v77_v26  ;;  %v41_v31 = vadd.f32 1.0, %v40_v28 }
  0xc2   :  { %v59_v35 = vand.u32 2147483647, %v77_v26  ;;  %vm44_vm1 = vcmp.lt.f32.partialorder %v43_v32, 0.0004427343 }
  0xc3   :  { %80 = vlog2.f32 %v53_v27  ;;  %v57_v33 = vadd.f32 1.0, %v56_v29  ;;  %v42_v38 = vmul.f32 %v75_v24, %v41_v31 }
  0xc4   :  { %vm60_vm2 = vcmp.lt.f32.partialorder %v59_v35, 0.0004427343 }
  0xc5   :  { %v58_v42 = vmul.f32 %v77_v26, %v57_v33 }
  0xce   :  { %v79_v34 = vpop.eup %78 }
  0xcf   :  { %v39_v37 = vmul.f32 0.6931472, %v79_v34 }
  0xd0   :  { %v81_v39 = vpop.eup %80 }
  0xd1   :  { %v45_v40 = vsel %vm44_vm1, %v42_v38, %v39_v37  ;;  %v55_v41 = vmul.f32 0.6931472, %v81_v39 }
  0xd2   :  { %v46_v46 = vsub.f32 %v32_v43, %v45_v40 }
  0xd3   :  { %v61_v45 = vsel %vm60_vm2, %v58_v42, %v55_v41 }
  0xd4   :  { %v62_v47 = vsub.f32 %v48_v44, %v61_v45 }
  0xd6   :  { %v66_v48 = vsel %vm65_vm3, %v46_v46, %v62_v47 }
  0xd7   :  { %67 = vst [vmem:[%s108_s2] sm:$0xff] %v66_v48 }

</bundles_post_ra>
